<compile_context>
chip_gen: v5e
topology: v5e:2x2
jax: 0.10.0
libtpu: 0.0.40
codegen_flags: <defaults>
</compile_context>

<pallas_src>
import math
import functools

import jax
import jax.numpy as jnp
from jax.experimental import pallas as pl
from jax.experimental.pallas import tpu as pltpu


def stf_attention_kernel(xs_ref, xt_ref,
                         wq_ref, bq_ref,
                         wk_ref, bk_ref,
                         wv_ref, bv_ref,
                         out_ref, *, bt, n):
    """Projections + softmax(QK^T/sqrt(hid))V + residual for Bt batches (= Bt*n rows)."""
    hid = wq_ref.shape[-1]

    xs2 = xs_ref[...].astype(jnp.float32)          # (Bt*n, C)  f32 (residual source)
    xt2 = xt_ref[...].astype(jnp.float32)          # (Bt*n, 2C)

    # bf16 operands for the MXU, f32 accumulation; bias adds stay f32.
    xs_b = xs2.astype(jnp.bfloat16)
    xt_b = xt2.astype(jnp.bfloat16)
    q = jnp.dot(xs_b, wq_ref[...], preferred_element_type=jnp.float32) + bq_ref[...]
    # Separate K / V matmuls (xt already resident, no extra DMA): a fused
    # (.., 2*hid) output would be sliced inside one 128-lane vreg at hid=32.
    k = jnp.dot(xt_b, wk_ref[...], preferred_element_type=jnp.float32) + bk_ref[...]
    v = jnp.dot(xt_b, wv_ref[...], preferred_element_type=jnp.float32) + bv_ref[...]

    # Fold 1/sqrt(hid) into q (fewer elements than scaling the NxN scores).
    q = q * jnp.float32(1.0 / math.sqrt(hid))

    qb = q.reshape(bt, n, hid).astype(jnp.bfloat16)
    kb = k.reshape(bt, n, hid).astype(jnp.bfloat16)
    vb = v.reshape(bt, n, hid).astype(jnp.bfloat16)

    # Scores (Bt, n, n): contract the last dims directly (no explicit k.T).
    # TODO(synk): confirm via pl.lower_as_mlir that this does not emit an XLU
    # transpose of k once key tiles reach flash scale.
    s = jnp.einsum("bnd,bmd->bnm", qb, kb, preferred_element_type=jnp.float32)

    # Numerically-stable softmax over the key axis (f32 VPU/EUP math).
    s = s - jnp.max(s, axis=-1, keepdims=True)
    p = jnp.exp(s)
    denom = jnp.sum(p, axis=-1, keepdims=True)
    attn = p * pl.reciprocal(denom, approx=True)   # EUP vrcp -> VALU stays free

    ctx = jnp.einsum("bnm,bmd->bnd", attn.astype(jnp.bfloat16), vb,
                     preferred_element_type=jnp.float32)

    # Residual with the original (`ori` == xs).  hid=32 < 128 lanes -> masked
    # partial stores; negligible at these sizes.
    out_ref[...] = (ctx.reshape(bt * n, hid) + xs2).astype(out_ref.dtype)


def _pick_batch_block(B, N, C, hid):
    """Pick Bt: >= 2 grid steps (v7x megacore + DMA pipelining), ~8 steps for
    large B, capped so per-step VMEM residency stays well under v7x's 64 MiB."""
    target_steps = 8 if B >= 8 else (2 if B >= 2 else 1)
    bt = pl.cdiv(B, target_steps)
    # Rough per-batch residency (bytes): double-buffered in/out tiles + f32
    # q/k/v/ctx + the (N, N) f32 score block.
    per_batch = N * (3 * C + hid) * 4 * 2 + 4 * N * hid * 4 + N * N * 4
    budget = 24 << 20
    bt = max(1, min(bt, budget // max(per_batch, 1)))
    # Prefer a Bt that divides B: avoids a garbage tail block (wasted work).
    while B % bt != 0:
        bt -= 1
    return bt


@functools.partial(jax.jit, static_argnames=("batch_block",))
def stf_forward(xs, xt, wq, bq, wk, bk, wv, bv, *, batch_block=None):
    B, N, C = xs.shape
    C2 = xt.shape[-1]
    hid = wq.shape[-1]

    Bt = _pick_batch_block(B, N, C, hid) if batch_block is None \
        else max(1, min(int(batch_block), B))
    grid = (pl.cdiv(B, Bt),)
    rows = Bt * N

    # Fold (B, N) -> B*N in the wrapper (metadata-only in HBM) so the kernel
    # sees 2-D row tiles; weights live in HBM as bf16 (half the weight DMA).
    xs2 = xs.reshape(B * N, C)
    xt2 = xt.reshape(B * N, C2)
    wq_b = wq.astype(jnp.bfloat16)
    wk_b = wk.astype(jnp.bfloat16)
    wv_b = wv.astype(jnp.bfloat16)

    kernel = functools.partial(stf_attention_kernel, bt=Bt, n=N)
    full = lambda shape: pl.BlockSpec(shape, lambda b: (0, 0))

    out2 = pl.pallas_call(
        kernel,
        out_shape=jax.ShapeDtypeStruct((B * N, hid), xs.dtype),
        grid=grid,
        in_specs=[
            pl.BlockSpec((rows, C), lambda b: (b, 0)),     # xs rows (Bt batches)
            pl.BlockSpec((rows, C2), lambda b: (b, 0)),    # xt rows
            full((C, hid)),    # wq (bf16)
            full((1, hid)),    # bq (f32)
            full((C2, hid)),   # wk (bf16)
            full((1, hid)),    # bk
            full((C2, hid)),   # wv (bf16)
            full((1, hid)),    # bv
        ],
        out_specs=pl.BlockSpec((rows, hid), lambda b: (b, 0)),
        compiler_params=pltpu.CompilerParams(
            dimension_semantics=("parallel",),
            # Above the 16/32 MiB scoped defaults, below every generation's
            # physical VMEM (v7x: 64 MiB).  v6e could go to ~100 MiB if Bt grows.
            vmem_limit_bytes=48 << 20,
        ),
        # TODO(synk): if the caller never reuses xs, alias it to the output
        # (input_output_aliases={0: 0}) to drop one HBM output allocation.
    )(xs2, xt2, wq_b, bq, wk_b, bk, wv_b, bv)

    return out2.reshape(B, N, hid)


def init_params(hidden_channels, key, dtype=jnp.float32):
    """Deterministic parameter init mirroring the nn.Linear shapes in S_Attention."""
    q_size = hidden_channels
    k_size = 2 * hidden_channels
    v_size = 2 * hidden_channels
    hid = hidden_channels

    keys = jax.random.split(key, 6)

    def linear(kw, kb, fan_in, fan_out):
        bound = 1.0 / math.sqrt(fan_in)
        w = jax.random.uniform(kw, (fan_in, fan_out), dtype, -bound, bound)
        b = jax.random.uniform(kb, (1, fan_out), dtype, -bound, bound)
        return w, b

    wq, bq = linear(keys[0], keys[1], q_size, hid)
    wk, bk = linear(keys[2], keys[3], k_size, hid)
    wv, bv = linear(keys[4], keys[5], v_size, hid)
    return dict(wq=wq, bq=bq, wk=wk, bk=bk, wv=wv, bv=bv)


def stf_forward_ref(xs, xt, p):
    """Pure-JAX reference mirroring the kernel's bf16-matmul / f32-softmax
    numerics (but exact softmax division), so the tolerance stays tight."""
    bf = jnp.bfloat16
    B, N, C = xs.shape
    C2 = xt.shape[-1]
    hid = p["wq"].shape[-1]

    xs2 = xs.reshape(B * N, C)
    xt2 = xt.reshape(B * N, C2)
    q = jnp.dot(xs2.astype(bf), p["wq"].astype(bf),
                preferred_element_type=jnp.float32) + p["bq"]
    k = jnp.dot(xt2.astype(bf), p["wk"].astype(bf),
                preferred_element_type=jnp.float32) + p["bk"]
    v = jnp.dot(xt2.astype(bf), p["wv"].astype(bf),
                preferred_element_type=jnp.float32) + p["bv"]
    q = q * (1.0 / math.sqrt(hid))

    qb = q.reshape(B, N, hid).astype(bf)
    kb = k.reshape(B, N, hid).astype(bf)
    vb = v.reshape(B, N, hid).astype(bf)
    s = jnp.einsum("bnd,bmd->bnm", qb, kb, preferred_element_type=jnp.float32)
    a = jax.nn.softmax(s, axis=-1)
    ctx = jnp.einsum("bnm,bmd->bnd", a.astype(bf), vb,
                     preferred_element_type=jnp.float32)
    return ctx + xs


if __name__ == "__main__":
    hidden_channels = 32
    B, N = 2, 16

    key = jax.random.PRNGKey(0)
    k_params, k_xs, k_xt = jax.random.split(key, 3)

    params = init_params(hidden_channels, k_params)
    xs = jax.random.normal(k_xs, (B, N, hidden_channels), jnp.float32)
    xt = jax.random.normal(k_xt, (B, N, 2 * hidden_channels), jnp.float32)

    out = stf_forward(xs, xt,
                      params["wq"], params["bq"],
                      params["wk"], params["bk"],
                      params["wv"], params["bv"])
    out = jax.block_until_ready(out)

    ref = stf_forward_ref(xs, xt, params)
    assert out.shape == (B, N, hidden_channels)
    # Reference mirrors the kernel's bf16 matmul numerics; remaining delta is the
    # approx EUP reciprocal (~2e-4 rel) plus exp/accumulation ulps.
    assert jnp.allclose(out, ref, atol=2e-3, rtol=2e-3), "mismatch vs reference"

    print("KERNEL_OK")
</pallas_src>

<mosaic_0001>
module attributes {stable_mosaic.version = 11 : i64} {
  func.func @stf_attention_kernel(%arg0: i32, %arg1: memref<16x32xf32, #tpu.memory_space<vmem>>, %arg2: memref<16x64xf32, #tpu.memory_space<vmem>>, %arg3: memref<32x32xbf16, #tpu.memory_space<vmem>>, %arg4: memref<1x32xf32, #tpu.memory_space<vmem>>, %arg5: memref<64x32xbf16, #tpu.memory_space<vmem>>, %arg6: memref<1x32xf32, #tpu.memory_space<vmem>>, %arg7: memref<64x32xbf16, #tpu.memory_space<vmem>>, %arg8: memref<1x32xf32, #tpu.memory_space<vmem>>, %arg9: memref<16x32xf32, #tpu.memory_space<vmem>>) attributes {dimension_semantics = [#tpu.dimension_semantics<parallel>], iteration_bounds = array<i64: 2>, scalar_prefetch = 0 : i64, scratch_operands = 0 : i64, tpu.core_type = #tpu.core_type<tc>, window_params = [{transform_indices = @transform_0, window_bounds = array<i64: 16, 32>}, {transform_indices = @transform_1, window_bounds = array<i64: 16, 64>}, {pipeline_mode = #tpu.pipeline_mode<synchronous>, transform_indices = @transform_2, window_bounds = array<i64: 32, 32>}, {pipeline_mode = #tpu.pipeline_mode<synchronous>, transform_indices = @transform_3, window_bounds = array<i64: 1, 32>}, {pipeline_mode = #tpu.pipeline_mode<synchronous>, transform_indices = @transform_4, window_bounds = array<i64: 64, 32>}, {pipeline_mode = #tpu.pipeline_mode<synchronous>, transform_indices = @transform_5, window_bounds = array<i64: 1, 32>}, {pipeline_mode = #tpu.pipeline_mode<synchronous>, transform_indices = @transform_6, window_bounds = array<i64: 64, 32>}, {pipeline_mode = #tpu.pipeline_mode<synchronous>, transform_indices = @transform_7, window_bounds = array<i64: 1, 32>}, {transform_indices = @transform_8, window_bounds = array<i64: 16, 32>}]} {
    %c0 = arith.constant 0 : index
    %c0_0 = arith.constant 0 : index
    %0 = vector.load %arg1[%c0, %c0_0] : memref<16x32xf32, #tpu.memory_space<vmem>>, vector<16x32xf32>
    %c0_1 = arith.constant 0 : index
    %c0_2 = arith.constant 0 : index
    %1 = vector.load %arg2[%c0_1, %c0_2] : memref<16x64xf32, #tpu.memory_space<vmem>>, vector<16x64xf32>
    %2 = arith.truncf %0 : vector<16x32xf32> to vector<16x32xbf16>
    %3 = arith.truncf %1 : vector<16x64xf32> to vector<16x64xbf16>
    %c0_3 = arith.constant 0 : index
    %c0_4 = arith.constant 0 : index
    %4 = vector.load %arg3[%c0_3, %c0_4] : memref<32x32xbf16, #tpu.memory_space<vmem>>, vector<32x32xbf16>
    %cst = arith.constant dense<0.000000e+00> : vector<16x32xf32>
    %5 = tpu.matmul %2, %4, %cst {dimension_numbers = #tpu.dot_dimension_numbers<[1], [0], [0], [1], [0, 0, 1, 1], [], []>} : vector<16x32xbf16>, vector<32x32xbf16>, vector<16x32xf32> -> vector<16x32xf32>
    %c0_5 = arith.constant 0 : index
    %c0_6 = arith.constant 0 : index
    %6 = vector.load %arg4[%c0_5, %c0_6] : memref<1x32xf32, #tpu.memory_space<vmem>>, vector<1x32xf32>
    %7 = vector.broadcast %6 : vector<1x32xf32> to vector<16x32xf32>
    %8 = arith.addf %5, %7 : vector<16x32xf32>
    %c0_7 = arith.constant 0 : index
    %c0_8 = arith.constant 0 : index
    %9 = vector.load %arg5[%c0_7, %c0_8] : memref<64x32xbf16, #tpu.memory_space<vmem>>, vector<64x32xbf16>
    %cst_9 = arith.constant dense<0.000000e+00> : vector<16x32xf32>
    %10 = tpu.matmul %3, %9, %cst_9 {dimension_numbers = #tpu.dot_dimension_numbers<[1], [0], [0], [1], [0, 0, 1, 1], [], []>} : vector<16x64xbf16>, vector<64x32xbf16>, vector<16x32xf32> -> vector<16x32xf32>
    %c0_10 = arith.constant 0 : index
    %c0_11 = arith.constant 0 : index
    %11 = vector.load %arg6[%c0_10, %c0_11] : memref<1x32xf32, #tpu.memory_space<vmem>>, vector<1x32xf32>
    %12 = vector.broadcast %11 : vector<1x32xf32> to vector<16x32xf32>
    %13 = arith.addf %10, %12 : vector<16x32xf32>
    %c0_12 = arith.constant 0 : index
    %c0_13 = arith.constant 0 : index
    %14 = vector.load %arg7[%c0_12, %c0_13] : memref<64x32xbf16, #tpu.memory_space<vmem>>, vector<64x32xbf16>
    %cst_14 = arith.constant dense<0.000000e+00> : vector<16x32xf32>
    %15 = tpu.matmul %3, %14, %cst_14 {dimension_numbers = #tpu.dot_dimension_numbers<[1], [0], [0], [1], [0, 0, 1, 1], [], []>} : vector<16x64xbf16>, vector<64x32xbf16>, vector<16x32xf32> -> vector<16x32xf32>
    %c0_15 = arith.constant 0 : index
    %c0_16 = arith.constant 0 : index
    %16 = vector.load %arg8[%c0_15, %c0_16] : memref<1x32xf32, #tpu.memory_space<vmem>>, vector<1x32xf32>
    %17 = vector.broadcast %16 : vector<1x32xf32> to vector<16x32xf32>
    %18 = arith.addf %15, %17 : vector<16x32xf32>
    %cst_17 = arith.constant 0.176776692 : f32
    %19 = vector.broadcast %cst_17 : f32 to vector<16x32xf32>
    %20 = arith.mulf %8, %19 : vector<16x32xf32>
    %21 = vector.shape_cast %20 : vector<16x32xf32> to vector<1x16x32xf32>
    %22 = arith.truncf %21 : vector<1x16x32xf32> to vector<1x16x32xbf16>
    %23 = vector.shape_cast %13 : vector<16x32xf32> to vector<1x16x32xf32>
    %24 = arith.truncf %23 : vector<1x16x32xf32> to vector<1x16x32xbf16>
    %25 = vector.shape_cast %18 : vector<16x32xf32> to vector<1x16x32xf32>
    %26 = arith.truncf %25 : vector<1x16x32xf32> to vector<1x16x32xbf16>
    "tpu.trace_start"() <{level = 10 : i32, message = "bnd,bmd->bnm"}> : () -> ()
    %cst_18 = arith.constant dense<0.000000e+00> : vector<1x16x16xf32>
    %27 = tpu.matmul %22, %24, %cst_18 {dimension_numbers = #tpu.dot_dimension_numbers<[2], [2], [1], [1], [0, 0, 0, 1, 1, 1], [0], [0]>} : vector<1x16x32xbf16>, vector<1x16x32xbf16>, vector<1x16x16xf32> -> vector<1x16x16xf32>
    "tpu.trace_stop"() : () -> ()
    %cst_19 = arith.constant dense<0xFF800000> : vector<1x16xf32>
    %28 = vector.multi_reduction <maximumf>, %27, %cst_19 [2] : vector<1x16x16xf32> to vector<1x16xf32>
    %29 = vector.shape_cast %28 : vector<1x16xf32> to vector<1x16x1xf32>
    %30 = vector.broadcast %29 : vector<1x16x1xf32> to vector<1x16x16xf32>
    %31 = arith.subf %27, %30 : vector<1x16x16xf32>
    %32 = math.exp %31 : vector<1x16x16xf32>
    %cst_20 = arith.constant dense<0.000000e+00> : vector<1x16xf32>
    %33 = vector.multi_reduction <add>, %32, %cst_20 [2] : vector<1x16x16xf32> to vector<1x16xf32>
    %34 = vector.shape_cast %33 : vector<1x16xf32> to vector<1x16x1xf32>
    %35 = tpu.reciprocal %34 {approx = true} : vector<1x16x1xf32> -> vector<1x16x1xf32>
    %36 = vector.broadcast %35 : vector<1x16x1xf32> to vector<1x16x16xf32>
    %37 = arith.mulf %32, %36 : vector<1x16x16xf32>
    %38 = arith.truncf %37 : vector<1x16x16xf32> to vector<1x16x16xbf16>
    "tpu.trace_start"() <{level = 10 : i32, message = "bnm,bmd->bnd"}> : () -> ()
    %cst_21 = arith.constant dense<0.000000e+00> : vector<1x16x32xf32>
    %39 = tpu.matmul %38, %26, %cst_21 {dimension_numbers = #tpu.dot_dimension_numbers<[2], [1], [1], [2], [0, 0, 0, 1, 1, 2], [0], [0]>} : vector<1x16x16xbf16>, vector<1x16x32xbf16>, vector<1x16x32xf32> -> vector<1x16x32xf32>
    "tpu.trace_stop"() : () -> ()
    %40 = vector.shape_cast %39 : vector<1x16x32xf32> to vector<16x32xf32>
    %41 = arith.addf %40, %0 : vector<16x32xf32>
    %c0_22 = arith.constant 0 : index
    %c0_23 = arith.constant 0 : index
    %42 = vector.load %arg9[%c0_22, %c0_23] : memref<16x32xf32, #tpu.memory_space<vmem>>, vector<16x32xf32>
    tpu.vector_store %arg9[%c0_22, %c0_23], %41 {strides = array<i32>} : memref<16x32xf32, #tpu.memory_space<vmem>>, vector<16x32xf32>,
    return
  }
  func.func @transform_0(%arg0: i32) -> (i32, i32) {
    %c0_i32 = arith.constant 0 : i32
    %c0_i32_0 = arith.constant 0 : i32
    return %arg0, %c0_i32 : i32, i32
  }
  func.func @transform_1(%arg0: i32) -> (i32, i32) {
    %c0_i32 = arith.constant 0 : i32
    %c0_i32_0 = arith.constant 0 : i32
    return %arg0, %c0_i32 : i32, i32
  }
  func.func @transform_2(%arg0: i32) -> (i32, i32) {
    %c0_i32 = arith.constant 0 : i32
    %c0_i32_0 = arith.constant 0 : i32
    %c0_i32_1 = arith.constant 0 : i32
    return %c0_i32, %c0_i32_0 : i32, i32
  }
  func.func @transform_3(%arg0: i32) -> (i32, i32) {
    %c0_i32 = arith.constant 0 : i32
    %c0_i32_0 = arith.constant 0 : i32
    %c0_i32_1 = arith.constant 0 : i32
    return %c0_i32, %c0_i32_0 : i32, i32
  }
  func.func @transform_4(%arg0: i32) -> (i32, i32) {
    %c0_i32 = arith.constant 0 : i32
    %c0_i32_0 = arith.constant 0 : i32
    %c0_i32_1 = arith.constant 0 : i32
    return %c0_i32, %c0_i32_0 : i32, i32
  }
  func.func @transform_5(%arg0: i32) -> (i32, i32) {
    %c0_i32 = arith.constant 0 : i32
    %c0_i32_0 = arith.constant 0 : i32
    %c0_i32_1 = arith.constant 0 : i32
    return %c0_i32, %c0_i32_0 : i32, i32
  }
  func.func @transform_6(%arg0: i32) -> (i32, i32) {
    %c0_i32 = arith.constant 0 : i32
    %c0_i32_0 = arith.constant 0 : i32
    %c0_i32_1 = arith.constant 0 : i32
    return %c0_i32, %c0_i32_0 : i32, i32
  }
  func.func @transform_7(%arg0: i32) -> (i32, i32) {
    %c0_i32 = arith.constant 0 : i32
    %c0_i32_0 = arith.constant 0 : i32
    %c0_i32_1 = arith.constant 0 : i32
    return %c0_i32, %c0_i32_0 : i32, i32
  }
  func.func @transform_8(%arg0: i32) -> (i32, i32) {
    %c0_i32 = arith.constant 0 : i32
    %c0_i32_0 = arith.constant 0 : i32
    return %arg0, %c0_i32 : i32, i32
  }
}

</mosaic_0001>

<bundles_post_ra>
// kernel: stf_forward.1
= control target key start
LH: loop header
LB: loop body
LE: loop exit
PB: predicated region body
PF: predicated region fallthrough
CT: control target
= control target key end

     0   :  { %13 = vsyncpa [#allocation3], 0  ;;  %s1040_s0 = inlined_call_operand.vmem [shape: f32[32,32], index: 0, kind: input, shape index: {}]   ;;  %s1041_s1 = inlined_call_operand.vmem [shape: f32[32,64], index: 1, kind: input, shape index: {}]   ;;  %s1042_s2 = inlined_call_operand.vmem [shape: bf16[32,32], index: 2, kind: input, shape index: {}]   ;;  %s1043_s3 = inlined_call_operand.vmem [shape: f32[1,32], index: 3, kind: input, shape index: {}]   ;;  %s1044_s4 = inlined_call_operand.vmem [shape: bf16[64,32], index: 4, kind: input, shape index: {}]   ;;  %s1045_s5 = inlined_call_operand.vmem [shape: f32[1,32], index: 5, kind: input, shape index: {}]   ;;  %s1046_s6 = inlined_call_operand.vmem [shape: bf16[64,32], index: 6, kind: input, shape index: {}]   ;;  %s1047_s7 = inlined_call_operand.vmem [shape: f32[1,32], index: 7, kind: input, shape index: {}]   ;;  %s1048_s8 = inlined_call_operand.hbm [shape: f32[32,32], index: 8, kind: output, shape index: {}]  }
   0x1   :  { %15 = vsyncpa [#allocation3 + $0x1], 0  ;;  %s894_s27 = smov 0   ;;  %s896_s28 = smov 0  }
   0x2   :  { %s898_s29 = smov 0   ;;  %s900_s30 = smov 0  }
   0x3 LB: > { %s915_s9 = sadd.s32 4294967295, %s845_s30   ;;  %s661_s10 = sadd.s32 4294967294, %s845_s30   ;;  %s845_s30 = sphi %s900_s30, %s1054_s30   ;;  %s841_s29 = sphi %s898_s29, %s1053_s29   ;;  %s837_s28 = sphi %s896_s28, %s1052_s28   ;;  %s833_s27 = sphi %s894_s27, %s1051_s27  }
   0x4   : > { %s919_s11 = sadd.s32 1, %s845_s30   ;;  %s206_s12 = sadd.s32 1, %s841_s29 }
   0x5   : > { %s203_s13 = ssub.s32 %s845_s30, %s919_s11  ;;  %p216_p0 = scmp.ne.s32.totalorder %s841_s29, %s837_s28 }
   0x6   : > { %p204_p1 = scmp.eq.s32.totalorder %s203_s13, 0  ;;  %p217_p2 = scmp.eq.s32.totalorder %s915_s9, 1 }
   0x7   : > { %p222_p3 = scmp.ne.s32.totalorder %s837_s28, %s833_s27  ;;  %p223_p4 = scmp.eq.s32.totalorder %s661_s10, 1 }
   0x8   : > { %s930_s14 = scalar_select %p204_p1, %s841_s29, %s206_s12  }
   0x9   : > { %p932_p5 = por %p217_p2, %p216_p0  ;;  %p936_p6 = por %p223_p4, %p222_p3 }
   0xa   : > { %p664_p7 = scmp.ge.s32.totalorder %s845_s30, 1  ;;  %p277_p8 = scmp.lt.s32.totalorder %s845_s30, 3 }
   0xc   : > { %p278_p9 = pnand %p664_p7, %p277_p8 }
   0xd   : > { %s666_s21 = sshll.u32 (!%p278_p9), %s915_s9, 1  ;;  %s313_s25 = sand.u32 (!%p278_p9), 1, %s837_s28  }
   0xe   : > { %281 = sbr.rel (%p278_p9) target bundleno = 725 (0x2d5), region = 52  ;;  %p317_p10 = scmp.lt.s32.totalorder (!%p278_p9), %s666_s21, 3 }
   0xf   : > { %s730_s10 = sshll.u32 (!%p278_p9), %s915_s9, 4  ;;  %s572_s9 = scalar_lea.sflag (!%p278_p9), [#allocation3], %s313_s25 }
  0x10   : > { %s583_s17 = scalar_lea.hbm (!%p278_p9), %s1048_s8, %s730_s10 }
  0x11   : > { %s586_s20 = sshll.u32 (!%p278_p9), %s583_s17, 4  ;;  %s587_s20 = int_to_ptr.hbm [resolvable:$true] %s586_s20 }
  0x13   : > { %v725_v0 = vld [vmem:[%s1044_s4 + $0x18] sm:$0xff]  ;;  %v721_v1 = vld [vmem:[%s1042_s2 + $0x8] sm:$0xff]  ;;  %v724_v2 = vld [vmem:[%s1044_s4 + $0x10] sm:$0xff]  ;;  %s1056_s21 = smov (!%p317_p10, %s666_s21), 3  ;;  %vm356_vm0 = vcmask 261120   ;;  %vm410_vm1 = vcmask 523264  }
  0x14   : > { %418 = vmatpush.bf16.msra.mxu1 %v725_v0  ;;  %366 = vmatpush.bf16.msra.mxu0 %v721_v1  ;;  %v720_v3 = vld [vmem:[%s1042_s2] sm:$0xff]  ;;  %s667_s26 = sshll.u32 %s1056_s21, 3  ;;  %v723_v4 = vld [vmem:[%s1044_s4 + $0x8] sm:$0xff]  ;;  %v729_v35 = vld [vmem:[%s1046_s6 + $0x18] sm:$0xff]  ;;  %vm516_vm2 = vcmask 130048  }
  0x15   : > { %s320_s18 = scalar_lea.vmem %s1040_s0, %s667_s26  ;;  %s326_s22 = scalar_lea.vmem %s1041_s1, %s667_s26  ;;  %v722_v8 = vld [vmem:[%s1044_s4] sm:$0xff]  ;;  %468 = vmatpush.bf16.msra.mxu2 %v729_v35  ;;  %v728_v36 = vld [vmem:[%s1046_s6 + $0x10] sm:$0xff]  ;;  %v727_v37 = vld [vmem:[%s1046_s6 + $0x8] sm:$0xff] }
  0x16   : > { %v961_v5 = vld [vmem:[%s320_s18] sm:$0xff]  ;;  %v963_v6 = vld [vmem:[%s320_s18 + $0x8] sm:$0xff]  ;;  %s665_s26 = sshll.u32 %s313_s25, 4 }
  0x17   : > { %v334_v7 = vpack.c.bf16 %v963_v6, %v961_v5  ;;  %v332_v9 = vld [vmem:[%s326_s22] sm:$0xff]  ;;  %v333_v10 = vld [vmem:[%s326_s22 + $0x8] sm:$0xff]  ;;  %s315_s18 = scalar_lea.vmem [#allocation2], %s665_s26  ;;  %s797_s22 = sshra.s32 %s587_s20, 4  ;;  %s798_s22 = int_to_ptr.hbm [resolvable:$true] %s797_s22 }
  0x18   : > { %419 = vmatpush.bf16.msra.mxu1 %v724_v2  ;;  %367 = vmatpush.bf16.msra.mxu0 %v720_v3  ;;  %v335_v11 = vpack.c.bf16 %v333_v10, %v332_v9  ;;  %v773_v14 = vld [vmem:[%s1045_s5] ss:$0 sm:$0xff]  ;;  %s584_s19 = sshll.u32 %s315_s18, 4  ;;  %s799_s21 = scalar_lea.hbm %s798_s22, 16  ;;  %s585_s19 = int_to_ptr.vmem [resolvable:$true] %s584_s19 }
  0x19   : > { %v772_v15 = vld [vmem:[%s1043_s3] ss:$0 sm:$0xff]  ;;  %469 = vmatpush.bf16.msra.mxu2 %v728_v36  ;;  %p800_p11 = scmp.ne.s32.totalorder %s798_s22, %s799_s21  ;;  %s803_s26 = scalar_lea.hbm %s1048_s8, 32 }
  0x1a   : > { %v726_v38 = vld [vmem:[%s1046_s6] sm:$0xff]  ;;  %p804_p0 = scmp.lt.s32.totalorder %s798_s22, %s1048_s8  ;;  %p805_p1 = scmp.lt.s32.totalorder %s803_s26, %s799_s21 }
  0x1b   : > { %678 = vmatmul.msk.bf16.vlgmr.msra.gmra.mxu0 %vm356_vm0, %v334_v7  ;;  %v774_v47 = vld [vmem:[%s1047_s7] ss:$0 sm:$0xff]  ;;  %p801_p12 = pnand %p800_p11, %p932_p5 }
  0x1c   : > { %420 = vmatpush.bf16.msra.mxu1 %v723_v4  ;;  %p806_p2 = por %p805_p1, %p804_p0 }
  0x1d   : > { %470 = vmatpush.bf16.msra.mxu2 %v727_v37  ;;  %p802_p13 = pneg %p801_p12 }
  0x1f   : > { %p807_p3 = pnand %p806_p2, %p802_p13 }
  0x20   : > { %421 = vmatpush.bf16.msra.mxu1 %v722_v8 }
  0x21   : > { %471 = vmatpush.bf16.msra.mxu2 %v726_v38 }
  0x23   : > { %695 = vmatmul.msk.bf16.vlgmr.msra.gmra.mxu1 %vm410_vm1, %v335_v11 }
  0x24   : > { %712 = vmatmul.msk.bf16.vlgmr.msra.gmra.mxu2 %vm410_vm1, %v335_v11 }
  0x98   : > { %v369_v12 = vpop.f32.mrf.mxu0 }
  0x99   : > { %v370_v18 = vadd.f32 %v772_v15, %v369_v12 }
  0x9b   : > { %v478_v23 = vmul.f32 0.17677669, %v370_v18 }
  0x9d   : > { %v480_v28 = vpack.c.bf16 %v478_v23, %v478_v23 }
  0x9f   : > { %v488_v32 = vunpack.c.l.b16 %v480_v28 }
  0xa0   : > { %v423_v13 = vpop.f32.mrf.mxu1  ;;  %v371_v16 = vpop.f32.mrf.mxu0 }
  0xa1   : > { %v424_v17 = vadd.f32 %v773_v14, %v423_v13  ;;  %v372_v19 = vadd.f32 %v772_v15, %v371_v16 }
  0xa3   : > { %v482_v21 = vpack.c.bf16 %v424_v17, %v424_v17  ;;  %v479_v24 = vmul.f32 0.17677669, %v372_v19 }
  0xa5   : > { %v493_v26 = vunpack.c.l.b16 %v482_v21  ;;  %v481_v29 = vpack.c.bf16 %v479_v24, %v479_v24 }
  0xa7   : > { %v489_v33 = vunpack.c.l.b16 %v481_v29  ;;  %v473_v49 = vpop.f32.mrf.mxu2 }
  0xa8   : > { %v425_v20 = vpop.f32.mrf.mxu1  ;;  %v474_v53 = vadd.f32 %v774_v47, %v473_v49 }
  0xa9   : > { %v426_v22 = vadd.f32 %v773_v14, %v425_v20  ;;  %v490_v34 = vpack.c.b16 %v489_v33, %v488_v32 }
  0xaa   : > { %v484_v54 = vpack.c.bf16 %v474_v53, %v474_v53 }
  0xab   : > { %v483_v25 = vpack.c.bf16 %v426_v22, %v426_v22 }
  0xac   : > { %v548_v59 = vunpack.c.l.b16 %v484_v54 }
  0xad   : > { %v494_v27 = vunpack.c.l.b16 %v483_v25 }
  0xaf   : > { %v495_v30 = vpack.c.b16 %v494_v27, %v493_v26  ;;  %v475_v55 = vpop.f32.mrf.mxu2 }
  0xb0   : > { %v476_v56 = vadd.f32 %v774_v47, %v475_v55 }
  0xb1   : > { %v500_v31 = vsel %vm356_vm0, %v495_v30, 0 }
  0xb2   : > { %509 = vmatpush.bf16.xpose.msra.mxu3 %v500_v31  ;;  %v485_v60 = vpack.c.bf16 %v476_v56, %v476_v56 }
  0xb4   : > { %v549_v61 = vunpack.c.l.b16 %v485_v60 }
  0xb6   : > { %v550_v62 = vpack.c.b16 %v549_v61, %v548_v59 }
  0xb8   : > { %562 = vmatpush.bf16.msrb.mxu0 %v550_v62 }
  0xb9   : > { %713 = vmatmul.msk.bf16.vlgmr.msra.gmra.mxu3 %vm356_vm0, %v490_v34 }
 0x13c   : > { %v511_v39 = vpop.f32.mrf.mxu3 }
 0x13d   : > { %v517_v40 = vsel %vm516_vm2, %v511_v39, -inf }
 0x13e   : > { %518 = vmax.xlane.f32.xlu0 %v517_v40 }
 0x144   : > { %v513_v41 = vpop.f32.mrf.mxu3 }
 0x145   : > { %v520_v42 = vsel %vm516_vm2, %v513_v41, -inf }
 0x146   : > { %521 = vmax.xlane.f32.xlu0 %v520_v42 }
 0x1b1   : > { %v519_v43 = vpop.xlane.xlu0 %518 }
 0x1b2   : > { %v523_v44 = vsub.f32 %v511_v39, %v519_v43 }
 0x1b4   : > { %v525_v45 = vmul.f32 1.442695, %v523_v44 }
 0x1b6   : > { %775 = vpow2.f32 %v525_v45 }
 0x1b9   : > { %v522_v46 = vpop.xlane.xlu0 %521 }
 0x1ba   : > { %v524_v48 = vsub.f32 %v513_v41, %v522_v46 }
 0x1bc   : > { %v776_v50 = vpop.eup %775  ;;  %v527_v51 = vmul.f32 1.442695, %v524_v48 }
 0x1bd   : > { %v529_v52 = vsel %vm516_vm2, %v776_v50, 0.0 }
 0x1be   : > { %777 = vpow2.f32 %v527_v51  ;;  %530 = vadd.xlane.f32.xlu1 %v529_v52 }
 0x1c4   : > { %v778_v57 = vpop.eup %777 }
 0x1c5   : > { %v532_v58 = vsel %vm516_vm2, %v778_v57, 0.0 }
 0x1c6   : > { %533 = vadd.xlane.f32.xlu1 %v532_v58 }
 0x231   : > { %v531_v63 = vpop.xlane.xlu1 %530 }
 0x232   : > { %779 = vrcp.f32 %v531_v63 }
 0x238   : > { %v780_v1 = vpop.eup %779 }
 0x239   : > { %v534_v0 = vpop.xlane.xlu1 %533  ;;  %v537_v2 = vmul.f32 %v780_v1, %v776_v50 }
 0x23a   : > { %781 = vrcp.f32 %v534_v0 }
 0x23b   : > { %v539_v4 = vpack.c.bf16 %v537_v2, %v537_v2 }
 0x23d   : > { %v543_v9 = vunpack.c.l.b16 %v539_v4 }
 0x240   : > { %v782_v3 = vpop.eup %781 }
 0x241   : > { %v538_v7 = vmul.f32 %v782_v3, %v778_v57 }
 0x243   : > { %v540_v8 = vpack.c.bf16 %v538_v7, %v538_v7 }
 0x245   : > { %v544_v10 = vunpack.c.l.b16 %v540_v8 }
 0x247   : > { %v545_v11 = vpack.c.b16 %v544_v10, %v543_v9 }
 0x249   : > { %714 = vmatmul.msk.bf16.vlgmr.msrb.gmra.mxu0 %vm516_vm2, %v545_v11 }
 0x2c6   : > { %v564_v12 = vpop.f32.mrf.mxu0 }
 0x2c7   : > { %v565_v13 = vadd.f32 %v564_v12, %v961_v5 }
 0x2c9   : > { %569 = vst.msk [vmem:[%s315_s18] sm:$0xff] %vm356_vm0, %v565_v13 }
 0x2ce   : > { %v566_v14 = vpop.f32.mrf.mxu0 }
 0x2cf   : > { %v567_v15 = vadd.f32 %v566_v14, %v963_v6 }
 0x2d1   : > { %570 = vst.msk [vmem:[%s315_s18 + $0x8] sm:$0xff] %vm356_vm0, %v567_v15 }
 0x2d2   : > { %810 = shalt.err (!%p807_p3)
}
 0x2d3   : > { %s847_s25 = smov 128   ;;  %s848_s13 = smov 8  }
 0x2d4   : > { %731 = dma.vmem_to_hbm [thread:$0]  (%p932_p5), %s585_s19, 256, %s587_s20, %s572_s9, %s847_s25, %s847_s25, %s848_s13  }
 0x2d5 PF: > { %p737_p4 = scmp.ge.s32.totalorder %s845_s30, 2  ;;  %s601_s17 = sand.u32 1, %s833_s27  }
 0x2d6   : > { %s602_s18 = scalar_lea.sflag [#allocation3], %s601_s17 }
 0x2d7   : > { %p734_p7 = pnand %p737_p4, %p936_p6 }
 0x2d9   : > { %p735_p8 = pneg %p734_p7 }
 0x2db   : > { %828 = dma.done.wait (%p735_p8), %s602_s18, 256  }
 0x2dc   : > { %830 = vsyncadd (%p735_p8), %s602_s18, 4294967040  ;;  %p18_p9 = scmp.ge.s32.totalorder %s919_s11, 4   ;;  %s1051_s27 = smov %s837_s28 }
 0x2dd   : > { %s1052_s28 = smov %s841_s29  ;;  %s1053_s29 = smov %s930_s14 }
 0x2de   : > { %s1054_s30 = smov %s919_s11  ;;  %20 = sbr.rel (!%p18_p9) target bundleno = 3 (0x3), region = 90 }
 0x2e3   :  { %608 = vsyncpa [#allocation3], 1 }
 0x2e4   :  { %610 = vsyncpa [#allocation3 + $0x1], 1 }

</bundles_post_ra>
